<compile_context>
chip_gen: v5e
topology: v5e:2x2
jax: 0.10.0
libtpu: 0.0.40
codegen_flags: <defaults>
</compile_context>

<pallas_src>
import jax
import jax.numpy as jnp
from jax import lax
from jax.experimental import pallas as pl
from jax.experimental.pallas import tpu as pltpu

IN_DIM = 52
HID = 32
EPS = 1e-5
NEG_SLOPE = 0.01      # LeakyReLU default
F_PAD = 64            # input features padded to 64 lanes (zeros -> exact)
LANE = 128


def _round_up(n, m):
    return ((n + m - 1) // m) * m


def _leaky_relu(x):
    return jnp.where(x >= 0, x, NEG_SLOPE * x)


def _make_kernel(b_total, tm, n_tiles, use_h1_cache, has_padding):
    inv_b = 1.0 / float(b_total)

    def kernel(x_ref, w12_ref, w3_ref, pv_ref, o_ref, st_ref, *rest):
        # st_ref rows: 0 sum1, 1 sumsq1, 2 sum2, 3 sumsq2, 4 scale1, 5 shift1, 6 scale2, 7 shift2
        h1c_ref = rest[0] if use_h1_cache else None
        phase = pl.program_id(0)
        tile = pl.program_id(1)

        def compute_h1():
            # Layer-1 pre-activation.  Linear bias b1 is dropped on purpose: training-mode BN
            # subtracts the batch mean, which cancels a per-feature constant exactly, and it
            # keeps padded (all-zero) x rows exactly zero -> no mask needed in phase 0.
            w1 = w12_ref[0:F_PAD, :]
            return jnp.dot(x_ref[...], w1, preferred_element_type=jnp.float32)

        def load_h1():
            if use_h1_cache:
                start = pl.multiple_of(tile * tm, tm)
                return h1c_ref[pl.ds(start, tm), :].astype(jnp.float32)
            return compute_h1()

        def layer2_pre(h1):
            scale1 = st_ref[4:5, :]
            shift1 = st_ref[5:6, :]
            a1 = _leaky_relu(h1 * scale1 + shift1)
            w2 = w12_ref[F_PAD:F_PAD + HID, :]
            return jnp.dot(a1.astype(w12_ref.dtype), w2,
                           preferred_element_type=jnp.float32)

        # ---------------- phase 0: layer-1 batch statistics (+ h1 cache) ----------------
        @pl.when(jnp.logical_and(phase == 0, tile == 0))
        def _():
            st_ref[...] = jnp.zeros_like(st_ref)

        @pl.when(phase == 0)
        def _():
            h1 = compute_h1()
            if use_h1_cache:
                start = pl.multiple_of(tile * tm, tm)
                h1c_ref[pl.ds(start, tm), :] = h1.astype(h1c_ref.dtype)
            # Padded rows are exactly zero -> contribute nothing; no mask required.
            st_ref[0:1, :] += jnp.sum(h1, axis=0, keepdims=True)
            st_ref[1:2, :] += jnp.sum(h1 * h1, axis=0, keepdims=True)

        # -------- phase 1: finalize BN1 (fused scale/shift), layer-2 batch statistics ---
        @pl.when(jnp.logical_and(phase == 1, tile == 0))
        def _():
            mean1 = st_ref[0:1, :] * inv_b
            var1 = jnp.maximum(st_ref[1:2, :] * inv_b - mean1 * mean1, 0.0)
            scale1 = pv_ref[0:1, 0:HID] * lax.rsqrt(var1 + EPS)
            st_ref[4:5, :] = scale1
            st_ref[5:6, :] = pv_ref[1:2, 0:HID] - mean1 * scale1

        @pl.when(phase == 1)
        def _():
            h2 = layer2_pre(load_h1())
            if has_padding:
                # Padded rows are NOT zero after BN1's shift -> mask them out of the stats.
                row = lax.broadcasted_iota(jnp.int32, (tm, 1), 0)
                mask = (row < (b_total - tile * tm)).astype(jnp.float32)
                hm = h2 * mask
            else:
                hm = h2
            st_ref[2:3, :] += jnp.sum(hm, axis=0, keepdims=True)
            st_ref[3:4, :] += jnp.sum(hm * h2, axis=0, keepdims=True)

        # ---------------- phase 2: finalize BN2, output head, lane-dense store ----------
        @pl.when(jnp.logical_and(phase == 2, tile == 0))
        def _():
            mean2 = st_ref[2:3, :] * inv_b
            var2 = jnp.maximum(st_ref[3:4, :] * inv_b - mean2 * mean2, 0.0)
            scale2 = pv_ref[2:3, 0:HID] * lax.rsqrt(var2 + EPS)
            st_ref[6:7, :] = scale2
            st_ref[7:8, :] = pv_ref[3:4, 0:HID] - mean2 * scale2

        @pl.when(phase == 2)
        def _():
            h2 = layer2_pre(load_h1())
            a2 = _leaky_relu(h2 * st_ref[6:7, :] + st_ref[7:8, :])
            out = jnp.dot(a2.astype(w3_ref.dtype), w3_ref[...],
                          preferred_element_type=jnp.float32) + pv_ref[4:5, :]
            o_ref[...] = out.astype(o_ref.dtype)

    return kernel


def sclassifier_online(x, params, *, tile_m=4096, compute_dtype=jnp.bfloat16,
                       out_dtype=jnp.float32, h1_cache_budget_bytes=16 << 20):
    """x: (B, 52). params: dict from init_params. Returns (B, output_dim) in out_dtype."""
    B = x.shape[0]
    out_dim = params["w3"].shape[1]
    out_pad = max(LANE, _round_up(out_dim, LANE))   # lane-dense output store

    # Big tiles amortize per-grid-step overhead; multiple of 16 for bf16 sublane packing.
    tm = _round_up(min(tile_m, _round_up(B, 16)), 16)
    b_pad = _round_up(B, tm)
    n_tiles = b_pad // tm
    has_padding = b_pad != B
    cd = compute_dtype
    itemsize_cd = jnp.dtype(cd).itemsize
    itemsize_out = jnp.dtype(out_dtype).itemsize

    # h1 cache: (b_pad, 32) is lane-padded to 128 lanes in VMEM -> budget on padded size.
    cache_vmem_bytes = b_pad * LANE * itemsize_cd
    use_h1_cache = cache_vmem_bytes <= h1_cache_budget_bytes

    # x padded to (b_pad, F_PAD); extra rows/cols are zeros (exact, see kernel comments).
    xp = jnp.zeros((b_pad, F_PAD), cd).at[:B, :IN_DIM].set(x.astype(cd))

    # Pack w1 (52,32) and w2 (32,32) into one sublane-aligned slab -> fewer input DMAs.
    w12 = jnp.zeros((F_PAD + HID, HID), cd)
    w12 = w12.at[:IN_DIM, :].set(params["w1"].astype(cd))
    w12 = w12.at[F_PAD:F_PAD + HID, :].set(params["w2"].astype(cd))

    # Output-head weight padded to lane-dense width.
    w3 = jnp.zeros((HID, out_pad), cd).at[:, :out_dim].set(params["w3"].astype(cd))

    # One small f32 slab for all per-feature vectors:
    # row 0 gamma1, 1 beta1, 2 gamma2, 3 beta2, 4 bias3.  (b1/b2 dropped: cancelled by BN.)
    pv = jnp.zeros((8, out_pad), jnp.float32)
    pv = pv.at[0, :HID].set(params["g1"].reshape(-1))
    pv = pv.at[1, :HID].set(params["be1"].reshape(-1))
    pv = pv.at[2, :HID].set(params["g2"].reshape(-1))
    pv = pv.at[3, :HID].set(params["be2"].reshape(-1))
    pv = pv.at[4, :out_dim].set(params["b3"].reshape(-1))

    # Index maps:
    #  * x is only fetched during phase 0 when h1 is cached; pinning it to the last block
    #    afterwards means zero extra DMAs in phases 1/2.
    #  * the output block is pinned to 0 until phase 2, so phases 0/1 never write (garbage)
    #    output tiles back to HBM; each tile is written exactly once, lane-dense.
    if use_h1_cache:
        x_index = lambda p, t: (jnp.where(p == 0, t, n_tiles - 1), 0)
    else:
        x_index = lambda p, t: (t, 0)
    out_index = lambda p, t: (jnp.where(p == 2, t, 0), 0)

    scratch = [pltpu.VMEM((8, HID), jnp.float32)]
    if use_h1_cache:
        scratch.append(pltpu.VMEM((b_pad, HID), cd))

    # Scoped-VMEM budget: double-buffered tiles + resident weights + h1 cache, with margin.
    est = (2 * tm * F_PAD * itemsize_cd
           + 2 * tm * out_pad * itemsize_out
           + 2 * (F_PAD + HID) * LANE * itemsize_cd
           + 2 * HID * out_pad * itemsize_cd
           + 2 * 8 * out_pad * 4
           + 8 * LANE * 4
           + (cache_vmem_bytes if use_h1_cache else 0))
    # TODO(synk): v7x has only 64 MiB physical VMEM (vs 128 on v5e/v6e) -- shrink tile_m /
    #             h1_cache_budget_bytes there if this cap is ever the binding constraint.
    vmem_limit = int(min(max(2 * est, 16 << 20), 64 << 20))

    kernel = _make_kernel(B, tm, n_tiles, use_h1_cache, has_padding)

    out_padded = pl.pallas_call(
        kernel,
        out_shape=jax.ShapeDtypeStruct((b_pad, out_pad), out_dtype),
        grid_spec=pltpu.PrefetchScalarGridSpec(
            num_scalar_prefetch=0,
            grid=(3, n_tiles),                                   # (phase, batch tile)
            in_specs=[
                pl.BlockSpec((tm, F_PAD), x_index),                       # x tile
                pl.BlockSpec((F_PAD + HID, HID), lambda p, t: (0, 0)),    # w1|w2 slab
                pl.BlockSpec((HID, out_pad), lambda p, t: (0, 0)),        # w3 (padded)
                pl.BlockSpec((8, out_pad), lambda p, t: (0, 0)),          # vector slab
            ],
            out_specs=pl.BlockSpec((tm, out_pad), out_index),
            scratch_shapes=scratch,
        ),
        compiler_params=pltpu.CompilerParams(
            # Stats accumulate across both axes -> strictly sequential grid.
            dimension_semantics=("arbitrary", "arbitrary"),
            vmem_limit_bytes=vmem_limit,
        ),
    )(xp, w12, w3, pv)

    return out_padded[:B, :out_dim]


def init_params(key, output_dim):
    """Deterministic synthetic parameters matching the module's shapes (x @ W layout)."""
    ks = jax.random.split(key, 8)
    w1 = jax.random.normal(ks[0], (IN_DIM, HID), jnp.float32) * 0.1
    b1 = jax.random.normal(ks[1], (HID,), jnp.float32) * 0.1
    w2 = jax.random.normal(ks[2], (HID, HID), jnp.float32) * 0.1
    b2 = jax.random.normal(ks[3], (HID,), jnp.float32) * 0.1
    w3 = jax.random.normal(ks[4], (HID, output_dim), jnp.float32) * 0.1
    b3 = jax.random.normal(ks[5], (output_dim,), jnp.float32) * 0.1
    g1 = jnp.ones((HID,), jnp.float32)
    be1 = jnp.zeros((HID,), jnp.float32)
    g2 = jnp.ones((HID,), jnp.float32)
    be2 = jnp.zeros((HID,), jnp.float32)
    return dict(w1=w1, b1=b1, g1=g1, be1=be1,
                w2=w2, b2=b2, g2=g2, be2=be2,
                w3=w3, b3=b3)


def reference(x, p):
    """Plain-JAX forward matching the PyTorch module (training-mode BN, biases kept)."""
    def bn(h, g, b):
        m = h.mean(0, keepdims=True)
        v = ((h - m) ** 2).mean(0, keepdims=True)
        return (h - m) / jnp.sqrt(v + EPS) * g + b

    h = _leaky_relu(bn(x @ p["w1"] + p["b1"], p["g1"], p["be1"]))
    h = _leaky_relu(bn(h @ p["w2"] + p["b2"], p["g2"], p["be2"]))
    return h @ p["w3"] + p["b3"]


if __name__ == "__main__":
    key = jax.random.PRNGKey(0)
    k_x, k_p = jax.random.split(key)

    batch = 20          # deliberately NOT a multiple of the tile -> exercises ragged masking
    output_dim = 10

    x = jax.random.normal(k_x, (batch, IN_DIM), jnp.float32)
    params = init_params(k_p, output_dim)
    ref = reference(x, params)

    # 1) f32 exactness, multi-tile path (tm=16 -> 2 tiles), h1 cached in VMEM.
    out = jax.block_until_ready(
        sclassifier_online(x, params, tile_m=8, compute_dtype=jnp.float32))
    assert out.shape == (batch, output_dim)
    assert jnp.allclose(out, ref, atol=5e-4, rtol=5e-4), "f32 (cached h1) kernel mismatch"

    # 2) f32 exactness with the streaming fallback (h1 cache disabled, x re-read per phase).
    out_s = jax.block_until_ready(
        sclassifier_online(x, params, tile_m=8, compute_dtype=jnp.float32,
                           h1_cache_budget_bytes=0))
    assert jnp.allclose(out_s, ref, atol=5e-4, rtol=5e-4), "f32 (streaming) kernel mismatch"

    # 3) default bf16 streams (v6e/v7x MXU path), single tile, loose sanity tolerance.
    out_bf16 = jax.block_until_ready(sclassifier_online(x, params))
    assert out_bf16.shape == (batch, output_dim)
    assert bool(jnp.all(jnp.isfinite(out_bf16)))
    assert jnp.allclose(out_bf16, ref, atol=2.5e-1, rtol=2.5e-1), "bf16 kernel grossly off"

    print("KERNEL_OK")
</pallas_src>

<mosaic_0001>
module attributes {stable_mosaic.version = 11 : i64} {
  func.func @kernel(%arg0: i32, %arg1: i32, %arg2: memref<16x64xf32, #tpu.memory_space<vmem>>, %arg3: memref<96x32xf32, #tpu.memory_space<vmem>>, %arg4: memref<32x128xf32, #tpu.memory_space<vmem>>, %arg5: memref<8x128xf32, #tpu.memory_space<vmem>>, %arg6: memref<16x128xf32, #tpu.memory_space<vmem>>, %arg7: memref<8x32xf32, #tpu.memory_space<vmem>>, %arg8: memref<32x32xf32, #tpu.memory_space<vmem>>) attributes {dimension_semantics = [#tpu.dimension_semantics<arbitrary>, #tpu.dimension_semantics<arbitrary>], iteration_bounds = array<i64: 3, 2>, scalar_prefetch = 0 : i64, scratch_operands = 2 : i64, tpu.core_type = #tpu.core_type<tc>, window_params = [{transform_indices = @transform_0, window_bounds = array<i64: 16, 64>}, {pipeline_mode = #tpu.pipeline_mode<synchronous>, transform_indices = @transform_1, window_bounds = array<i64: 96, 32>}, {pipeline_mode = #tpu.pipeline_mode<synchronous>, transform_indices = @transform_2, window_bounds = array<i64: 32, 128>}, {pipeline_mode = #tpu.pipeline_mode<synchronous>, transform_indices = @transform_3, window_bounds = array<i64: 8, 128>}, {transform_indices = @transform_4, window_bounds = array<i64: 16, 128>}]} {
    %c0_i32 = arith.constant 0 : i32
    %0 = arith.cmpi eq, %arg0, %c0_i32 : i32
    %c0_i32_0 = arith.constant 0 : i32
    %1 = arith.cmpi eq, %arg1, %c0_i32_0 : i32
    %2 = arith.andi %0, %1 : i1
    %3 = arith.extui %2 : i1 to i32
    %c0_i32_1 = arith.constant 0 : i32
    %4 = arith.cmpi ne, %3, %c0_i32_1 : i32
    scf.if %4 {
      %cst = arith.constant 0.000000e+00 : f32
      %24 = vector.broadcast %cst : f32 to vector<8x32xf32>
      %c0 = arith.constant 0 : index
      %c0_12 = arith.constant 0 : index
      %25 = vector.load %arg7[%c0, %c0_12] : memref<8x32xf32, #tpu.memory_space<vmem>>, vector<8x32xf32>
      tpu.vector_store %arg7[%c0, %c0_12], %24 {strides = array<i32>} : memref<8x32xf32, #tpu.memory_space<vmem>>, vector<8x32xf32>,
    } else {
    }
    %c0_i32_2 = arith.constant 0 : i32
    %5 = arith.cmpi eq, %arg0, %c0_i32_2 : i32
    %6 = arith.extui %5 : i1 to i32
    %c0_i32_3 = arith.constant 0 : i32
    %7 = arith.cmpi ne, %6, %c0_i32_3 : i32
    scf.if %7 {
      %c0 = arith.constant 0 : index
      %c0_12 = arith.constant 0 : index
      %24 = vector.load %arg3[%c0, %c0_12] : memref<96x32xf32, #tpu.memory_space<vmem>>, vector<64x32xf32>
      %c0_13 = arith.constant 0 : index
      %c0_14 = arith.constant 0 : index
      %25 = vector.load %arg2[%c0_13, %c0_14] : memref<16x64xf32, #tpu.memory_space<vmem>>, vector<16x64xf32>
      %cst = arith.constant dense<0.000000e+00> : vector<16x32xf32>
      %26 = tpu.matmul %25, %24, %cst {dimension_numbers = #tpu.dot_dimension_numbers<[1], [0], [0], [1], [0, 0, 1, 1], [], []>} : vector<16x64xf32>, vector<64x32xf32>, vector<16x32xf32> -> vector<16x32xf32>
      %c16_i32 = arith.constant 16 : i32
      %27 = arith.muli %arg1, %c16_i32 : i32
      %28 = tpu.assume_multiple %27, 16 : i32
      %29 = arith.index_cast %28 : i32 to index
      %c0_15 = arith.constant 0 : index
      %30 = vector.load %arg8[%29, %c0_15] : memref<32x32xf32, #tpu.memory_space<vmem>>, vector<16x32xf32>
      tpu.vector_store %arg8[%29, %c0_15], %26 {strides = array<i32>} : memref<32x32xf32, #tpu.memory_space<vmem>>, vector<16x32xf32>,
      %c0_16 = arith.constant 0 : index
      %c0_17 = arith.constant 0 : index
      %31 = vector.load %arg7[%c0_16, %c0_17] : memref<8x32xf32, #tpu.memory_space<vmem>>, vector<1x32xf32>
      %cst_18 = arith.constant dense<0.000000e+00> : vector<32xf32>
      %32 = vector.multi_reduction <add>, %26, %cst_18 [0] : vector<16x32xf32> to vector<32xf32>
      %33 = vector.shape_cast %32 : vector<32xf32> to vector<1x32xf32>
      %34 = arith.addf %31, %33 : vector<1x32xf32>
      %c0_19 = arith.constant 0 : index
      %c0_20 = arith.constant 0 : index
      %35 = vector.load %arg7[%c0_19, %c0_20] : memref<8x32xf32, #tpu.memory_space<vmem>>, vector<1x32xf32>
      tpu.vector_store %arg7[%c0_19, %c0_20], %34 {strides = array<i32>} : memref<8x32xf32, #tpu.memory_space<vmem>>, vector<1x32xf32>,
      %c1 = arith.constant 1 : index
      %c0_21 = arith.constant 0 : index
      %36 = vector.load %arg7[%c1, %c0_21] : memref<8x32xf32, #tpu.memory_space<vmem>>, vector<1x32xf32>
      %37 = arith.mulf %26, %26 : vector<16x32xf32>
      %cst_22 = arith.constant dense<0.000000e+00> : vector<32xf32>
      %38 = vector.multi_reduction <add>, %37, %cst_22 [0] : vector<16x32xf32> to vector<32xf32>
      %39 = vector.shape_cast %38 : vector<32xf32> to vector<1x32xf32>
      %40 = arith.addf %36, %39 : vector<1x32xf32>
      %c1_23 = arith.constant 1 : index
      %c0_24 = arith.constant 0 : index
      %41 = vector.load %arg7[%c1_23, %c0_24] : memref<8x32xf32, #tpu.memory_space<vmem>>, vector<1x32xf32>
      tpu.vector_store %arg7[%c1_23, %c0_24], %40 {strides = array<i32>} : memref<8x32xf32, #tpu.memory_space<vmem>>, vector<1x32xf32>,
    } else {
    }
    %c1_i32 = arith.constant 1 : i32
    %8 = arith.cmpi eq, %arg0, %c1_i32 : i32
    %c0_i32_4 = arith.constant 0 : i32
    %9 = arith.cmpi eq, %arg1, %c0_i32_4 : i32
    %10 = arith.andi %8, %9 : i1
    %11 = arith.extui %10 : i1 to i32
    %c0_i32_5 = arith.constant 0 : i32
    %12 = arith.cmpi ne, %11, %c0_i32_5 : i32
    scf.if %12 {
      %c0 = arith.constant 0 : index
      %c0_12 = arith.constant 0 : index
      %24 = vector.load %arg7[%c0, %c0_12] : memref<8x32xf32, #tpu.memory_space<vmem>>, vector<1x32xf32>
      %cst = arith.constant 5.000000e-02 : f32
      %25 = vector.broadcast %cst : f32 to vector<1x32xf32>
      %26 = arith.mulf %24, %25 : vector<1x32xf32>
      %c1 = arith.constant 1 : index
      %c0_13 = arith.constant 0 : index
      %27 = vector.load %arg7[%c1, %c0_13] : memref<8x32xf32, #tpu.memory_space<vmem>>, vector<1x32xf32>
      %cst_14 = arith.constant 5.000000e-02 : f32
      %28 = vector.broadcast %cst_14 : f32 to vector<1x32xf32>
      %29 = arith.mulf %27, %28 : vector<1x32xf32>
      %30 = arith.mulf %26, %26 : vector<1x32xf32>
      %31 = arith.subf %29, %30 : vector<1x32xf32>
      %cst_15 = arith.constant 0.000000e+00 : f32
      %32 = vector.broadcast %cst_15 : f32 to vector<1x32xf32>
      %33 = arith.maximumf %31, %32 : vector<1x32xf32>
      %c0_16 = arith.constant 0 : index
      %c0_17 = arith.constant 0 : index
      %34 = vector.load %arg5[%c0_16, %c0_17] : memref<8x128xf32, #tpu.memory_space<vmem>>, vector<1x32xf32>
      %cst_18 = arith.constant 9.99999974E-6 : f32
      %35 = vector.broadcast %cst_18 : f32 to vector<1x32xf32>
      %36 = arith.addf %33, %35 : vector<1x32xf32>
      %37 = math.rsqrt %36 : vector<1x32xf32>
      %38 = arith.mulf %34, %37 : vector<1x32xf32>
      %c4 = arith.constant 4 : index
      %c0_19 = arith.constant 0 : index
      %39 = vector.load %arg7[%c4, %c0_19] : memref<8x32xf32, #tpu.memory_space<vmem>>, vector<1x32xf32>
      tpu.vector_store %arg7[%c4, %c0_19], %38 {strides = array<i32>} : memref<8x32xf32, #tpu.memory_space<vmem>>, vector<1x32xf32>,
      %c1_20 = arith.constant 1 : index
      %c0_21 = arith.constant 0 : index
      %40 = vector.load %arg5[%c1_20, %c0_21] : memref<8x128xf32, #tpu.memory_space<vmem>>, vector<1x32xf32>
      %41 = arith.mulf %26, %38 : vector<1x32xf32>
      %42 = arith.subf %40, %41 : vector<1x32xf32>
      %c5 = arith.constant 5 : index
      %c0_22 = arith.constant 0 : index
      %43 = vector.load %arg7[%c5, %c0_22] : memref<8x32xf32, #tpu.memory_space<vmem>>, vector<1x32xf32>
      tpu.vector_store %arg7[%c5, %c0_22], %42 {strides = array<i32>} : memref<8x32xf32, #tpu.memory_space<vmem>>, vector<1x32xf32>,
    } else {
    }
    %c1_i32_6 = arith.constant 1 : i32
    %13 = arith.cmpi eq, %arg0, %c1_i32_6 : i32
    %14 = arith.extui %13 : i1 to i32
    %c0_i32_7 = arith.constant 0 : i32
    %15 = arith.cmpi ne, %14, %c0_i32_7 : i32
    scf.if %15 {
      %c16_i32 = arith.constant 16 : i32
      %24 = arith.muli %arg1, %c16_i32 : i32
      %25 = tpu.assume_multiple %24, 16 : i32
      %26 = arith.index_cast %25 : i32 to index
      %c0 = arith.constant 0 : index
      %27 = vector.load %arg8[%26, %c0] : memref<32x32xf32, #tpu.memory_space<vmem>>, vector<16x32xf32>
      %c4 = arith.constant 4 : index
      %c0_12 = arith.constant 0 : index
      %28 = vector.load %arg7[%c4, %c0_12] : memref<8x32xf32, #tpu.memory_space<vmem>>, vector<1x32xf32>
      %c5 = arith.constant 5 : index
      %c0_13 = arith.constant 0 : index
      %29 = vector.load %arg7[%c5, %c0_13] : memref<8x32xf32, #tpu.memory_space<vmem>>, vector<1x32xf32>
      %30 = vector.broadcast %28 : vector<1x32xf32> to vector<16x32xf32>
      %31 = arith.mulf %27, %30 : vector<16x32xf32>
      %32 = vector.broadcast %29 : vector<1x32xf32> to vector<16x32xf32>
      %33 = arith.addf %31, %32 : vector<16x32xf32>
      %cst = arith.constant 0.000000e+00 : f32
      %34 = vector.broadcast %cst : f32 to vector<16x32xf32>
      %35 = arith.cmpf oge, %33, %34 : vector<16x32xf32>
      %cst_14 = arith.constant 0.00999999977 : f32
      %36 = vector.broadcast %cst_14 : f32 to vector<16x32xf32>
      %37 = arith.mulf %36, %33 : vector<16x32xf32>
      %38 = arith.select %35, %33, %37 : vector<16x32xi1>, vector<16x32xf32>
      %c64 = arith.constant 64 : index
      %c0_15 = arith.constant 0 : index
      %39 = vector.load %arg3[%c64, %c0_15] : memref<96x32xf32, #tpu.memory_space<vmem>>, vector<32x32xf32>
      %cst_16 = arith.constant dense<0.000000e+00> : vector<16x32xf32>
      %40 = tpu.matmul %38, %39, %cst_16 {dimension_numbers = #tpu.dot_dimension_numbers<[1], [0], [0], [1], [0, 0, 1, 1], [], []>} : vector<16x32xf32>, vector<32x32xf32>, vector<16x32xf32> -> vector<16x32xf32>
      %41 = tpu.iota {dimensions = array<i32: 0>} : vector<16x1xi32>
      %c16_i32_17 = arith.constant 16 : i32
      %42 = arith.muli %arg1, %c16_i32_17 : i32
      %c20_i32 = arith.constant 20 : i32
      %43 = arith.subi %c20_i32, %42 : i32
      %44 = vector.broadcast %43 : i32 to vector<16x1xi32>
      %45 = arith.cmpi slt, %41, %44 : vector<16x1xi32>
      %46 = arith.extui %45 : vector<16x1xi1> to vector<16x1xi32>
      %47 = arith.sitofp %46 : vector<16x1xi32> to vector<16x1xf32>
      %48 = vector.broadcast %47 : vector<16x1xf32> to vector<16x32xf32>
      %49 = arith.mulf %40, %48 : vector<16x32xf32>
      %c2 = arith.constant 2 : index
      %c0_18 = arith.constant 0 : index
      %50 = vector.load %arg7[%c2, %c0_18] : memref<8x32xf32, #tpu.memory_space<vmem>>, vector<1x32xf32>
      %cst_19 = arith.constant dense<0.000000e+00> : vector<32xf32>
      %51 = vector.multi_reduction <add>, %49, %cst_19 [0] : vector<16x32xf32> to vector<32xf32>
      %52 = vector.shape_cast %51 : vector<32xf32> to vector<1x32xf32>
      %53 = arith.addf %50, %52 : vector<1x32xf32>
      %c2_20 = arith.constant 2 : index
      %c0_21 = arith.constant 0 : index
      %54 = vector.load %arg7[%c2_20, %c0_21] : memref<8x32xf32, #tpu.memory_space<vmem>>, vector<1x32xf32>
      tpu.vector_store %arg7[%c2_20, %c0_21], %53 {strides = array<i32>} : memref<8x32xf32, #tpu.memory_space<vmem>>, vector<1x32xf32>,
      %c3 = arith.constant 3 : index
      %c0_22 = arith.constant 0 : index
      %55 = vector.load %arg7[%c3, %c0_22] : memref<8x32xf32, #tpu.memory_space<vmem>>, vector<1x32xf32>
      %56 = arith.mulf %49, %40 : vector<16x32xf32>
      %cst_23 = arith.constant dense<0.000000e+00> : vector<32xf32>
      %57 = vector.multi_reduction <add>, %56, %cst_23 [0] : vector<16x32xf32> to vector<32xf32>
      %58 = vector.shape_cast %57 : vector<32xf32> to vector<1x32xf32>
      %59 = arith.addf %55, %58 : vector<1x32xf32>
      %c3_24 = arith.constant 3 : index
      %c0_25 = arith.constant 0 : index
      %60 = vector.load %arg7[%c3_24, %c0_25] : memref<8x32xf32, #tpu.memory_space<vmem>>, vector<1x32xf32>
      tpu.vector_store %arg7[%c3_24, %c0_25], %59 {strides = array<i32>} : memref<8x32xf32, #tpu.memory_space<vmem>>, vector<1x32xf32>,
    } else {
    }
    %c2_i32 = arith.constant 2 : i32
    %16 = arith.cmpi eq, %arg0, %c2_i32 : i32
    %c0_i32_8 = arith.constant 0 : i32
    %17 = arith.cmpi eq, %arg1, %c0_i32_8 : i32
    %18 = arith.andi %16, %17 : i1
    %19 = arith.extui %18 : i1 to i32
    %c0_i32_9 = arith.constant 0 : i32
    %20 = arith.cmpi ne, %19, %c0_i32_9 : i32
    scf.if %20 {
      %c2 = arith.constant 2 : index
      %c0 = arith.constant 0 : index
      %24 = vector.load %arg7[%c2, %c0] : memref<8x32xf32, #tpu.memory_space<vmem>>, vector<1x32xf32>
      %cst = arith.constant 5.000000e-02 : f32
      %25 = vector.broadcast %cst : f32 to vector<1x32xf32>
      %26 = arith.mulf %24, %25 : vector<1x32xf32>
      %c3 = arith.constant 3 : index
      %c0_12 = arith.constant 0 : index
      %27 = vector.load %arg7[%c3, %c0_12] : memref<8x32xf32, #tpu.memory_space<vmem>>, vector<1x32xf32>
      %cst_13 = arith.constant 5.000000e-02 : f32
      %28 = vector.broadcast %cst_13 : f32 to vector<1x32xf32>
      %29 = arith.mulf %27, %28 : vector<1x32xf32>
      %30 = arith.mulf %26, %26 : vector<1x32xf32>
      %31 = arith.subf %29, %30 : vector<1x32xf32>
      %cst_14 = arith.constant 0.000000e+00 : f32
      %32 = vector.broadcast %cst_14 : f32 to vector<1x32xf32>
      %33 = arith.maximumf %31, %32 : vector<1x32xf32>
      %c2_15 = arith.constant 2 : index
      %c0_16 = arith.constant 0 : index
      %34 = vector.load %arg5[%c2_15, %c0_16] : memref<8x128xf32, #tpu.memory_space<vmem>>, vector<1x32xf32>
      %cst_17 = arith.constant 9.99999974E-6 : f32
      %35 = vector.broadcast %cst_17 : f32 to vector<1x32xf32>
      %36 = arith.addf %33, %35 : vector<1x32xf32>
      %37 = math.rsqrt %36 : vector<1x32xf32>
      %38 = arith.mulf %34, %37 : vector<1x32xf32>
      %c6 = arith.constant 6 : index
      %c0_18 = arith.constant 0 : index
      %39 = vector.load %arg7[%c6, %c0_18] : memref<8x32xf32, #tpu.memory_space<vmem>>, vector<1x32xf32>
      tpu.vector_store %arg7[%c6, %c0_18], %38 {strides = array<i32>} : memref<8x32xf32, #tpu.memory_space<vmem>>, vector<1x32xf32>,
      %c3_19 = arith.constant 3 : index
      %c0_20 = arith.constant 0 : index
      %40 = vector.load %arg5[%c3_19, %c0_20] : memref<8x128xf32, #tpu.memory_space<vmem>>, vector<1x32xf32>
      %41 = arith.mulf %26, %38 : vector<1x32xf32>
      %42 = arith.subf %40, %41 : vector<1x32xf32>
      %c7 = arith.constant 7 : index
      %c0_21 = arith.constant 0 : index
      %43 = vector.load %arg7[%c7, %c0_21] : memref<8x32xf32, #tpu.memory_space<vmem>>, vector<1x32xf32>
      tpu.vector_store %arg7[%c7, %c0_21], %42 {strides = array<i32>} : memref<8x32xf32, #tpu.memory_space<vmem>>, vector<1x32xf32>,
    } else {
    }
    %c2_i32_10 = arith.constant 2 : i32
    %21 = arith.cmpi eq, %arg0, %c2_i32_10 : i32
    %22 = arith.extui %21 : i1 to i32
    %c0_i32_11 = arith.constant 0 : i32
    %23 = arith.cmpi ne, %22, %c0_i32_11 : i32
    scf.if %23 {
      %c16_i32 = arith.constant 16 : i32
      %24 = arith.muli %arg1, %c16_i32 : i32
      %25 = tpu.assume_multiple %24, 16 : i32
      %26 = arith.index_cast %25 : i32 to index
      %c0 = arith.constant 0 : index
      %27 = vector.load %arg8[%26, %c0] : memref<32x32xf32, #tpu.memory_space<vmem>>, vector<16x32xf32>
      %c4 = arith.constant 4 : index
      %c0_12 = arith.constant 0 : index
      %28 = vector.load %arg7[%c4, %c0_12] : memref<8x32xf32, #tpu.memory_space<vmem>>, vector<1x32xf32>
      %c5 = arith.constant 5 : index
      %c0_13 = arith.constant 0 : index
      %29 = vector.load %arg7[%c5, %c0_13] : memref<8x32xf32, #tpu.memory_space<vmem>>, vector<1x32xf32>
      %30 = vector.broadcast %28 : vector<1x32xf32> to vector<16x32xf32>
      %31 = arith.mulf %27, %30 : vector<16x32xf32>
      %32 = vector.broadcast %29 : vector<1x32xf32> to vector<16x32xf32>
      %33 = arith.addf %31, %32 : vector<16x32xf32>
      %cst = arith.constant 0.000000e+00 : f32
      %34 = vector.broadcast %cst : f32 to vector<16x32xf32>
      %35 = arith.cmpf oge, %33, %34 : vector<16x32xf32>
      %cst_14 = arith.constant 0.00999999977 : f32
      %36 = vector.broadcast %cst_14 : f32 to vector<16x32xf32>
      %37 = arith.mulf %36, %33 : vector<16x32xf32>
      %38 = arith.select %35, %33, %37 : vector<16x32xi1>, vector<16x32xf32>
      %c64 = arith.constant 64 : index
      %c0_15 = arith.constant 0 : index
      %39 = vector.load %arg3[%c64, %c0_15] : memref<96x32xf32, #tpu.memory_space<vmem>>, vector<32x32xf32>
      %cst_16 = arith.constant dense<0.000000e+00> : vector<16x32xf32>
      %40 = tpu.matmul %38, %39, %cst_16 {dimension_numbers = #tpu.dot_dimension_numbers<[1], [0], [0], [1], [0, 0, 1, 1], [], []>} : vector<16x32xf32>, vector<32x32xf32>, vector<16x32xf32> -> vector<16x32xf32>
      %c6 = arith.constant 6 : index
      %c0_17 = arith.constant 0 : index
      %41 = vector.load %arg7[%c6, %c0_17] : memref<8x32xf32, #tpu.memory_space<vmem>>, vector<1x32xf32>
      %42 = vector.broadcast %41 : vector<1x32xf32> to vector<16x32xf32>
      %43 = arith.mulf %40, %42 : vector<16x32xf32>
      %c7 = arith.constant 7 : index
      %c0_18 = arith.constant 0 : index
      %44 = vector.load %arg7[%c7, %c0_18] : memref<8x32xf32, #tpu.memory_space<vmem>>, vector<1x32xf32>
      %45 = vector.broadcast %44 : vector<1x32xf32> to vector<16x32xf32>
      %46 = arith.addf %43, %45 : vector<16x32xf32>
      %cst_19 = arith.constant 0.000000e+00 : f32
      %47 = vector.broadcast %cst_19 : f32 to vector<16x32xf32>
      %48 = arith.cmpf oge, %46, %47 : vector<16x32xf32>
      %cst_20 = arith.constant 0.00999999977 : f32
      %49 = vector.broadcast %cst_20 : f32 to vector<16x32xf32>
      %50 = arith.mulf %49, %46 : vector<16x32xf32>
      %51 = arith.select %48, %46, %50 : vector<16x32xi1>, vector<16x32xf32>
      %c0_21 = arith.constant 0 : index
      %c0_22 = arith.constant 0 : index
      %52 = vector.load %arg4[%c0_21, %c0_22] : memref<32x128xf32, #tpu.memory_space<vmem>>, vector<32x128xf32>
      %cst_23 = arith.constant dense<0.000000e+00> : vector<16x128xf32>
      %53 = tpu.matmul %51, %52, %cst_23 {dimension_numbers = #tpu.dot_dimension_numbers<[1], [0], [0], [1], [0, 0, 1, 1], [], []>} : vector<16x32xf32>, vector<32x128xf32>, vector<16x128xf32> -> vector<16x128xf32>
      %c4_24 = arith.constant 4 : index
      %c0_25 = arith.constant 0 : index
      %54 = vector.load %arg5[%c4_24, %c0_25] : memref<8x128xf32, #tpu.memory_space<vmem>>, vector<1x128xf32>
      %55 = vector.broadcast %54 : vector<1x128xf32> to vector<16x128xf32>
      %56 = arith.addf %53, %55 : vector<16x128xf32>
      %c0_26 = arith.constant 0 : index
      %c0_27 = arith.constant 0 : index
      %57 = vector.load %arg6[%c0_26, %c0_27] : memref<16x128xf32, #tpu.memory_space<vmem>>, vector<16x128xf32>
      tpu.vector_store %arg6[%c0_26, %c0_27], %56 {strides = array<i32>} : memref<16x128xf32, #tpu.memory_space<vmem>>, vector<16x128xf32>,
    } else {
    }
    return
  }
  func.func @transform_0(%arg0: i32, %arg1: i32) -> (i32, i32) {
    %c0_i32 = arith.constant 0 : i32
    %0 = arith.cmpi eq, %arg0, %c0_i32 : i32
    %c1_i32 = arith.constant 1 : i32
    %1 = arith.select %0, %arg1, %c1_i32 : i32
    %c0_i32_0 = arith.constant 0 : i32
    %c0_i32_1 = arith.constant 0 : i32
    return %1, %c0_i32_0 : i32, i32
  }
  func.func @transform_1(%arg0: i32, %arg1: i32) -> (i32, i32) {
    %c0_i32 = arith.constant 0 : i32
    %c0_i32_0 = arith.constant 0 : i32
    %c0_i32_1 = arith.constant 0 : i32
    return %c0_i32, %c0_i32_0 : i32, i32
  }
  func.func @transform_2(%arg0: i32, %arg1: i32) -> (i32, i32) {
    %c0_i32 = arith.constant 0 : i32
    %c0_i32_0 = arith.constant 0 : i32
    %c0_i32_1 = arith.constant 0 : i32
    return %c0_i32, %c0_i32_0 : i32, i32
  }
  func.func @transform_3(%arg0: i32, %arg1: i32) -> (i32, i32) {
    %c0_i32 = arith.constant 0 : i32
    %c0_i32_0 = arith.constant 0 : i32
    %c0_i32_1 = arith.constant 0 : i32
    return %c0_i32, %c0_i32_0 : i32, i32
  }
  func.func @transform_4(%arg0: i32, %arg1: i32) -> (i32, i32) {
    %c2_i32 = arith.constant 2 : i32
    %0 = arith.cmpi eq, %arg0, %c2_i32 : i32
    %c0_i32 = arith.constant 0 : i32
    %1 = arith.select %0, %arg1, %c0_i32 : i32
    %c0_i32_0 = arith.constant 0 : i32
    %c0_i32_1 = arith.constant 0 : i32
    return %1, %c0_i32_0 : i32, i32
  }
}

</mosaic_0001>

<bundles_post_ra>
// kernel: tpu_custom_call.1
= control target key start
LH: loop header
LB: loop body
LE: loop exit
PB: predicated region body
PF: predicated region fallthrough
CT: control target
= control target key end

     0   :  { %9 = vsyncpa [#allocation5], 0  ;;  %s1175_s0 = inlined_call_operand.vmem [shape: f32[32,64], index: 0, kind: input, shape index: {}]   ;;  %s1176_s1 = inlined_call_operand.vmem [shape: f32[96,32], index: 1, kind: input, shape index: {}]   ;;  %s1177_s2 = inlined_call_operand.vmem [shape: f32[32,128], index: 2, kind: input, shape index: {}]   ;;  %s1178_s3 = inlined_call_operand.vmem [shape: f32[8,128], index: 3, kind: input, shape index: {}]   ;;  %s1179_s4 = inlined_call_operand.hbm [shape: f32[32,128], index: 4, kind: output, shape index: {}]  }
   0x1   :  { %11 = vsyncpa [#allocation5 + $0x1], 0  ;;  %s935_s15 = smov 0   ;;  %s937_s16 = smov 0  }
   0x2   :  { %s939_s17 = smov 0   ;;  %s941_s18 = smov 0  }
   0x3   :  { %s943_s19 = smov 0   ;;  %s945_s20 = smov 0  }
   0x4   :  { %s947_s21 = smov 0   ;;  %s949_s22 = smov 0  }
   0x5 LB: > { %s674_s23 = sadd.s32 4294967295, %s904_s22   ;;  %s26_s24 = sadd.s32 1, %s896_s20  ;;  %s904_s22 = sphi %s949_s22, %s17_s22   ;;  %s900_s21 = sphi %s947_s21, %s1188_s21   ;;  %s896_s20 = sphi %s945_s20, %s1187_s20   ;;  %s892_s19 = sphi %s943_s19, %s1186_s19   ;;  %s888_s18 = sphi %s941_s18, %s1185_s18   ;;  %s884_s17 = sphi %s939_s17, %s1184_s17   ;;  %s880_s16 = sphi %s937_s16, %s1183_s16   ;;  %s876_s15 = sphi %s935_s15, %s1182_s15  }
   0x6   : > { %s29_s25 = sadd.s32 1, %s900_s21  ;;  %p27_p0 = scmp.ge.s32.totalorder %s26_s24, 2 }
   0x7   : > { %p126_p1 = scmp.eq.s32.totalorder %s900_s21, 2  ;;  %s675_s26 = sadd.s32 4294967294, %s904_s22  }
   0x8   : > { %p143_p2 = scmp.ne.s32.totalorder %s884_s17, %s880_s16  ;;  %s1190_s24 = smov (%p27_p0, %s26_s24), 0 }
   0x9   : > { %s1192_s25 = smov (!%p27_p0, %s29_s25), %s900_s21  ;;  %p144_p4 = scmp.eq.s32.totalorder %s674_s23, 5 }
   0xa   : > { %s127_s27 = scalar_select %p126_p1, %s896_s20, 0 }
   0xb   : > { %p31_p3 = scmp.ge.s32.totalorder %s1192_s25, 3  ;;  %p149_p5 = scmp.ne.s32.totalorder %s880_s16, %s876_s15 }
   0xc   : > { %p150_p6 = scmp.eq.s32.totalorder %s675_s26, 5  ;;  %p990_p7 = por %p144_p4, %p143_p2 }
   0xd   : > { %s1194_s25 = smov (%p31_p3, %s1192_s25), 0  ;;  %p678_p10 = scmp.ge.s32.totalorder %s904_s22, 1 }
   0xe   : > { %p994_p8 = por %p150_p6, %p149_p5  ;;  %p128_p9 = scmp.eq.s32.totalorder %s1194_s25, 2 }
   0xf   : > { %p190_p11 = scmp.lt.s32.totalorder %s904_s22, 7  ;;  %s133_s6 = sadd.s32 1, %s884_s17 }
  0x10   : > { %s129_s30 = scalar_select %p128_p9, %s1190_s24, 0 }
  0x11   : > { %p191_p12 = pnand %p678_p10, %p190_p11 }
  0x12   : > { %s130_s5 = ssub.s32 %s127_s27, %s129_s30  ;;  %s215_s8 = sand.u32 (!%p191_p12), 1, %s880_s16  }
  0x13   : > { %p131_p13 = scmp.eq.s32.totalorder %s130_s5, 0  ;;  %194 = sbr.rel (%p191_p12) target bundleno = 765 (0x2fd), region = 36 }
  0x14   : > { %p218_p0 = scmp.eq.s32.totalorder (!%p191_p12), %s892_s19, 0  ;;  %s679_s9 = sshll.u32 (!%p191_p12), %s215_s8, 4 }
  0x15   : > { %s1004_s7 = scalar_select %p131_p13, %s884_s17, %s133_s6  }
  0x16   : > { %p232_p1 = scmp.eq.s32.totalorder (!%p191_p12), %s888_s18, 0  ;;  %s1019_s26 = scalar_lea.vmem (!%p191_p12), [#allocation4], %s679_s9 }
  0x18   : > { %s219_s10 = scalar_select %p218_p0, %s888_s18, 1 }
  0x19   : > { %p233_p2 = pnand %p232_p1, %p218_p0 }
  0x1a   : > { %s680_s11 = sshll.u32 %s219_s10, 1 }
  0x1b   : > { %p221_p3 = scmp.lt.s32.totalorder %s680_s11, 3  ;;  %236 = sbr.rel (%p233_p2) target bundleno = 34 (0x22), region = 40 }
  0x1d   : > { %s1196_s11 = smov (!%p221_p3, %s680_s11), 3 }
  0x1e   : > { %s681_s12 = sshll.u32 %s1196_s11, 3 }
  0x1f   : > { %s1017_s23 = scalar_lea.vmem %s1175_s0, %s681_s12 }
  0x20   : > { %vm237_vm0 = vcmask 261120   ;;  %v906_v0 = vmov 0.0  }
  0x21   : > { %238 = vst.msk [vmem:[#allocation2] sm:$0xff] %vm237_vm0, %v906_v0 }
  0x22 PF: > { %p682_p4 = scmp.ne.s32.totalorder %s892_s19, 0 }
  0x23   : > { %s685_s11 = sshll.u32 (!%p682_p4), %s888_s18, 4 }
  0x24   : > { %241 = sbr.rel (%p682_p4) target bundleno = 203 (0xcb), region = 44  ;;  %s283_s12 = scalar_lea.vmem (!%p682_p4), [#allocation3], %s685_s11 }
  0x29   : > { %v249_v1 = vld [vmem:[%s1176_s1 + $0x38] sm:$0xff]  ;;  %v248_v2 = vld [vmem:[%s1176_s1 + $0x30] sm:$0xff]  ;;  %v247_v3 = vld [vmem:[%s1176_s1 + $0x28] sm:$0xff]  ;;  %vm252_vm1 = vcmask 523264   ;;  %vm284_vm2 = vcmask 261120   ;;  %vm298_vm3 = vcmask 253952  }
  0x2a   : > { %267 = vmatpush.msra.mxu0 %v249_v1  ;;  %704 = vmatpush.msra.mxu1 %v249_v1  ;;  %v246_v4 = vld [vmem:[%s1176_s1 + $0x20] sm:$0xff]  ;;  %v245_v5 = vld [vmem:[%s1176_s1 + $0x18] sm:$0xff]  ;;  %v244_v6 = vld [vmem:[%s1176_s1 + $0x10] sm:$0xff] }
  0x2b   : > { %v243_v7 = vld [vmem:[%s1176_s1 + $0x8] sm:$0xff]  ;;  %v242_v8 = vld [vmem:[%s1176_s1] sm:$0xff] }
  0x2c   : > { %268 = vmatpush.msra.mxu0 %v248_v2  ;;  %705 = vmatpush.msra.mxu1 %v248_v2  ;;  %v250_v9 = vld [vmem:[%s1017_s23] sm:$0xff]  ;;  %v251_v10 = vld [vmem:[%s1017_s23 + $0x8] sm:$0xff] }
  0x2d   : > { %v287_v30 = vld [vmem:[#allocation2] sm:$0x1]  ;;  %v300_v33 = vld [vmem:[#allocation2 + $0x1] sm:$0x1] }
  0x2e   : > { %269 = vmatpush.msra.mxu0 %v247_v3  ;;  %706 = vmatpush.msra.mxu1 %v247_v3 }
  0x30   : > { %270 = vmatpush.msra.mxu0 %v246_v4  ;;  %707 = vmatpush.msra.mxu1 %v246_v4 }
  0x32   : > { %271 = vmatpush.msra.mxu0 %v245_v5  ;;  %708 = vmatpush.msra.mxu1 %v245_v5 }
  0x34   : > { %272 = vmatpush.msra.mxu0 %v244_v6  ;;  %709 = vmatpush.msra.mxu1 %v244_v6 }
  0x36   : > { %273 = vmatpush.msra.mxu0 %v243_v7  ;;  %710 = vmatpush.msra.mxu1 %v243_v7 }
  0x38   : > { %274 = vmatpush.msra.mxu0 %v242_v8  ;;  %711 = vmatpush.msra.mxu1 %v242_v8 }
  0x39   : > { %683 = vmatmul.msk.f32.vlgmr.msra.gmra.mxu0 %vm252_vm1, %v250_v9  ;;  %684 = vmatmul.msk.f32.vlgmr.msra.gmra.mxu1 %vm252_vm1, %v251_v10 }
  0xb6   : > { %v276_v11 = vpop.f32.mrf.mxu0  ;;  %v279_v12 = vpop.f32.mrf.mxu1 }
  0xb7   : > { %285 = vst.msk [vmem:[%s283_s12] sm:$0xff] %vm284_vm2, %v276_v11  ;;  %v288_v13 = vsel %vm284_vm2, %v276_v11, 0.0  ;;  %v301_v14 = vmul.f32 %v276_v11, %v276_v11  ;;  %v289_v15 = vsel %vm284_vm2, %v279_v12, 0.0  ;;  %v302_v16 = vmul.f32 %v279_v12, %v279_v12 }
  0xb8   : > { %286 = vst.msk [vmem:[%s283_s12 + $0x8] sm:$0xff] %vm284_vm2, %v279_v12  ;;  %v290_v17 = vadd.f32 %v289_v15, %v288_v13 }
  0xb9   : > { %v303_v18 = vsel %vm284_vm2, %v301_v14, 0.0  ;;  %v304_v19 = vsel %vm284_vm2, %v302_v16, 0.0 }
  0xba   : > { %v291_v20 = vrot.slane %v290_v17, 4  ;;  %v305_v21 = vadd.f32 %v304_v19, %v303_v18 }
  0xbc   : > { %v292_v22 = vadd.f32 %v291_v20, %v290_v17  ;;  %v306_v23 = vrot.slane %v305_v21, 4 }
  0xbe   : > { %v293_v24 = vrot.slane %v292_v22, 2  ;;  %v307_v25 = vadd.f32 %v306_v23, %v305_v21 }
  0xc0   : > { %v294_v26 = vadd.f32 %v293_v24, %v292_v22  ;;  %v308_v27 = vrot.slane %v307_v25, 2 }
  0xc2   : > { %v295_v28 = vrot.slane %v294_v26, 1  ;;  %v309_v29 = vadd.f32 %v308_v27, %v307_v25 }
  0xc4   : > { %v296_v31 = vadd.f32 %v295_v28, %v294_v26  ;;  %v310_v32 = vrot.slane %v309_v29, 1 }
  0xc6   : > { %v297_v34 = vadd.f32 %v296_v31, %v287_v30  ;;  %v311_v35 = vadd.f32 %v310_v32, %v309_v29 }
  0xc8   : > { %299 = vst.msk [vmem:[#allocation2] sm:$0x1] %vm298_vm3, %v297_v34  ;;  %v312_v36 = vadd.f32 %v311_v35, %v300_v33 }
  0xca   : > { %313 = vst.msk [vmem:[#allocation2 + $0x1] sm:$0x1] %vm298_vm3, %v312_v36 }
  0xcb PF: > { %p314_p5 = scmp.eq.s32.totalorder %s892_s19, 1 }
  0xcd   : > { %p315_p6 = pnand %p314_p5, %p232_p1 }
  0xcf   : > { %318 = sbr.rel (%p315_p6) target bundleno = 248 (0xf8), region = 48 }
  0xd4   : > { %v319_v37 = vld [vmem:[#allocation2] sm:$0x1]  ;;  %v321_v38 = vld [vmem:[#allocation2 + $0x1] sm:$0x1]  ;;  %vm339_vm7 = vcmask 253952  }
  0xd5   : > { %v320_v39 = vmul.f32 0.05, %v319_v37  ;;  %v322_v40 = vmul.f32 0.05, %v321_v38  ;;  %v326_v50 = vld [vmem:[%s1178_s3] sm:$0x1] }
  0xd6   : > { %v341_v54 = vld [vmem:[%s1178_s3 + $0x1] sm:$0x1] }
  0xd7   : > { %v323_v41 = vmul.f32 %v320_v39, %v320_v39 }
  0xd9   : > { %v324_v42 = vsub.f32 %v322_v40, %v323_v41 }
  0xdb   : > { %v325_v43 = vmax.f32 %v324_v42, 0.0 }
  0xdd   : > { %v327_v44 = vadd.f32 1e-05, %v325_v43 }
  0xdf   : > { %799 = vrsqrt.f32 %v327_v44  ;;  %vm334_vm4 = vweird.f32 %v327_v44 }
  0xe5   : > { %v800_v45 = vpop.eup %799 }
  0xe6   : > { %v329_v46 = vmul.f32 %v800_v45, %v327_v44  ;;  %vm335_vm5 = vweird.f32 %v800_v45 }
  0xe7   : > { %vm336_vm6 = vmor %vm334_vm4, %vm335_vm5 }
  0xe8   : > { %v330_v47 = vmul.f32 %v800_v45, %v329_v46 }
  0xea   : > { %v331_v48 = vmul.f32 0.5, %v330_v47 }
  0xec   : > { %v332_v49 = vsub.f32 1.5, %v331_v48 }
  0xee   : > { %v333_v51 = vmul.f32 %v800_v45, %v332_v49 }
  0xf0   : > { %v337_v52 = vsel %vm336_vm6, %v800_v45, %v333_v51 }
  0xf1   : > { %v338_v53 = vmul.f32 %v337_v52, %v326_v50 }
  0xf3   : > { %340 = vst.msk [vmem:[#allocation2 + $0x4] sm:$0x1] %vm339_vm7, %v338_v53  ;;  %v342_v55 = vmul.f32 %v338_v53, %v320_v39 }
  0xf5   : > { %v343_v56 = vsub.f32 %v341_v54, %v342_v55 }
  0xf7   : > { %344 = vst.msk [vmem:[#allocation2 + $0x5] sm:$0x1] %vm339_vm7, %v343_v56 }
  0xf8 PF: > { %p686_p9 = scmp.ne.s32.totalorder %s892_s19, 1 }
  0xf9   : > { %s687_s10 = sshll.u32 (!%p686_p9), %s888_s18, 4 }
  0xfa   : > { %347 = sbr.rel (%p686_p9) target bundleno = 413 (0x19d), region = 52  ;;  %s349_s23 = scalar_lea.vmem (!%p686_p9), [#allocation3], %s687_s10 }
  0xfb   : > { %s403_s27 = ssub.s32 (!%p686_p9), 20, %s687_s10 }
  0xff   : > { %v369_v57 = vld [vmem:[%s1176_s1 + $0x58] sm:$0xff]  ;;  %v368_v58 = vld [vmem:[%s1176_s1 + $0x50] sm:$0xff]  ;;  %v367_v59 = vld [vmem:[%s1176_s1 + $0x48] sm:$0xff]  ;;  %vm370_vm8 = vcmask 261120   ;;  %v400_v9 = vlaneseq  ;;  %v404_v12 = vstv %s403_s27  ;;  %v907_v13 = vmov 0.0  }
 0x100   : > { %389 = vmatpush.msra.mxu0 %v369_v57  ;;  %712 = vmatpush.msra.mxu1 %v369_v57  ;;  %v350_v60 = vld [vmem:[%s349_s23] sm:$0xff]  ;;  %v351_v63 = vld [vmem:[%s349_s23 + $0x8] sm:$0xff]  ;;  %vm424_vm13 = vcmask 253952  }
 0x101   : > { %v801_v61 = vld [vmem:[#allocation2 + $0x4] ss:$0 sm:$0xff]  ;;  %v802_v62 = vld [vmem:[#allocation2 + $0x5] ss:$0 sm:$0xff]  ;;  %v401_v10 = vshrl.u32 %v400_v9, 7 }
 0x102   : > { %390 = vmatpush.msra.mxu0 %v368_v58  ;;  %713 = vmatpush.msra.mxu1 %v368_v58  ;;  %v366_v0 = vld [vmem:[%s1176_s1 + $0x40] sm:$0xff]  ;;  %v355_v1 = vmul.f32 %v801_v61, %v350_v60  ;;  %v356_v2 = vmul.f32 %v801_v61, %v351_v63 }
 0x103   : > { %v402_v11 = vadd.s32 8, %v401_v10  ;;  %vm405_vm11 = vcmp.lt.s32.totalorder %v401_v10, %v404_v12  ;;  %v413_v37 = vld [vmem:[#allocation2 + $0x2] sm:$0x1]  ;;  %v426_v40 = vld [vmem:[#allocation2 + $0x3] sm:$0x1] }
 0x104   : > { %391 = vmatpush.msra.mxu0 %v367_v59  ;;  %714 = vmatpush.msra.mxu1 %v367_v59  ;;  %v358_v3 = vadd.f32 %v802_v62, %v355_v1  ;;  %v359_v4 = vadd.f32 %v802_v62, %v356_v2  ;;  %v690_v14 = vsel %vm405_vm11, 1.0, %v907_v13 }
 0x105   : > { %vm406_vm12 = vcmp.lt.s32.totalorder %v402_v11, %v404_v12 }
 0x106   : > { %392 = vmatpush.msra.mxu0 %v366_v0  ;;  %715 = vmatpush.msra.mxu1 %v366_v0  ;;  %vm360_vm9 = vcmp.ge.f32.partialorder %v358_v3, 0.0  ;;  %v362_v5 = vmul.f32 0.01, %v358_v3  ;;  %vm361_vm10 = vcmp.ge.f32.partialorder %v359_v4, 0.0  ;;  %v363_v6 = vmul.f32 0.01, %v359_v4 }
 0x107   : > { %v691_v15 = vsel %vm406_vm12, 1.0, %v907_v13 }
 0x108   : > { %v364_v7 = vsel %vm360_vm9, %v358_v3, %v362_v5  ;;  %v365_v8 = vsel %vm361_vm10, %v359_v4, %v363_v6 }
 0x109   : > { %688 = vmatmul.msk.f32.vlgmr.msra.gmra.mxu0 %vm370_vm8, %v364_v7  ;;  %689 = vmatmul.msk.f32.vlgmr.msra.gmra.mxu1 %vm370_vm8, %v365_v8 }
 0x186   : > { %v394_v16 = vpop.f32.mrf.mxu0  ;;  %v397_v17 = vpop.f32.mrf.mxu1 }
 0x187   : > { %v411_v18 = vmul.f32 %v690_v14, %v394_v16  ;;  %v412_v19 = vmul.f32 %v691_v15, %v397_v17 }
 0x189   : > { %v414_v20 = vsel %vm370_vm8, %v411_v18, 0.0  ;;  %v427_v21 = vmul.f32 %v411_v18, %v394_v16  ;;  %v415_v22 = vsel %vm370_vm8, %v412_v19, 0.0  ;;  %v428_v23 = vmul.f32 %v412_v19, %v397_v17 }
 0x18a   : > { %v416_v24 = vadd.f32 %v415_v22, %v414_v20 }
 0x18b   : > { %v429_v25 = vsel %vm370_vm8, %v427_v21, 0.0  ;;  %v430_v26 = vsel %vm370_vm8, %v428_v23, 0.0 }
 0x18c   : > { %v417_v27 = vrot.slane %v416_v24, 4  ;;  %v431_v28 = vadd.f32 %v430_v26, %v429_v25 }
 0x18e   : > { %v418_v29 = vadd.f32 %v417_v27, %v416_v24  ;;  %v432_v30 = vrot.slane %v431_v28, 4 }
 0x190   : > { %v419_v31 = vrot.slane %v418_v29, 2  ;;  %v433_v32 = vadd.f32 %v432_v30, %v431_v28 }
 0x192   : > { %v420_v33 = vadd.f32 %v419_v31, %v418_v29  ;;  %v434_v34 = vrot.slane %v433_v32, 2 }
 0x194   : > { %v421_v35 = vrot.slane %v420_v33, 1  ;;  %v435_v36 = vadd.f32 %v434_v34, %v433_v32 }
 0x196   : > { %v422_v38 = vadd.f32 %v421_v35, %v420_v33  ;;  %v436_v39 = vrot.slane %v435_v36, 1 }
 0x198   : > { %v423_v41 = vadd.f32 %v422_v38, %v413_v37  ;;  %v437_v42 = vadd.f32 %v436_v39, %v435_v36 }
 0x19a   : > { %425 = vst.msk [vmem:[#allocation2 + $0x2] sm:$0x1] %vm424_vm13, %v423_v41  ;;  %v438_v43 = vadd.f32 %v437_v42, %v426_v40 }
 0x19c   : > { %439 = vst.msk [vmem:[#allocation2 + $0x3] sm:$0x1] %vm424_vm13, %v438_v43 }
 0x19d PF: > { %p440_p10 = scmp.eq.s32.totalorder %s892_s19, 2 }
 0x19f   : > { %p441_p11 = pnand %p440_p10, %p232_p1 }
 0x1a1   : > { %444 = sbr.rel (%p441_p11) target bundleno = 458 (0x1ca), region = 56 }
 0x1a6   : > { %v445_v44 = vld [vmem:[#allocation2 + $0x2] sm:$0x1]  ;;  %v447_v45 = vld [vmem:[#allocation2 + $0x3] sm:$0x1]  ;;  %vm465_vm1 = vcmask 253952  }
 0x1a7   : > { %v446_v46 = vmul.f32 0.05, %v445_v44  ;;  %v448_v47 = vmul.f32 0.05, %v447_v45  ;;  %v452_v57 = vld [vmem:[%s1178_s3 + $0x2] sm:$0x1] }
 0x1a8   : > { %v467_v61 = vld [vmem:[%s1178_s3 + $0x3] sm:$0x1] }
 0x1a9   : > { %v449_v48 = vmul.f32 %v446_v46, %v446_v46 }
 0x1ab   : > { %v450_v49 = vsub.f32 %v448_v47, %v449_v48 }
 0x1ad   : > { %v451_v50 = vmax.f32 %v450_v49, 0.0 }
 0x1af   : > { %v453_v51 = vadd.f32 1e-05, %v451_v50 }
 0x1b1   : > { %803 = vrsqrt.f32 %v453_v51  ;;  %vm460_vm14 = vweird.f32 %v453_v51 }
 0x1b7   : > { %v804_v52 = vpop.eup %803 }
 0x1b8   : > { %v455_v53 = vmul.f32 %v804_v52, %v453_v51  ;;  %vm461_vm15 = vweird.f32 %v804_v52 }
 0x1b9   : > { %vm462_vm0 = vmor %vm460_vm14, %vm461_vm15 }
 0x1ba   : > { %v456_v54 = vmul.f32 %v804_v52, %v455_v53 }
 0x1bc   : > { %v457_v55 = vmul.f32 0.5, %v456_v54 }
 0x1be   : > { %v458_v56 = vsub.f32 1.5, %v457_v55 }
 0x1c0   : > { %v459_v58 = vmul.f32 %v804_v52, %v458_v56 }
 0x1c2   : > { %v463_v59 = vsel %vm462_vm0, %v804_v52, %v459_v58 }
 0x1c3   : > { %v464_v60 = vmul.f32 %v463_v59, %v452_v57 }
 0x1c5   : > { %466 = vst.msk [vmem:[#allocation2 + $0x6] sm:$0x1] %vm465_vm1, %v464_v60  ;;  %v468_v62 = vmul.f32 %v464_v60, %v446_v46 }
 0x1c7   : > { %v469_v63 = vsub.f32 %v467_v61, %v468_v62 }
 0x1c9   : > { %470 = vst.msk [vmem:[#allocation2 + $0x7] sm:$0x1] %vm465_vm1, %v469_v63 }
 0x1ca PF: > { %p692_p12 = scmp.ne.s32.totalorder %s892_s19, 2 }
 0x1cb   : > { %s693_s13 = sshll.u32 (!%p692_p12), %s888_s18, 4 }
 0x1cc   : > { %473 = sbr.rel (%p692_p12) target bundleno = 748 (0x2ec), region = 60  ;;  %s475_s30 = scalar_lea.vmem (!%p692_p12), [#allocation3], %s693_s13 }
 0x1d1   : > { %v495_v0 = vld [vmem:[%s1176_s1 + $0x58] sm:$0xff]  ;;  %v494_v1 = vld [vmem:[%s1176_s1 + $0x50] sm:$0xff]  ;;  %v493_v2 = vld [vmem:[%s1176_s1 + $0x48] sm:$0xff]  ;;  %vm496_vm2 = vcmask 261120  }
 0x1d2   : > { %716 = vmatpush.msra.mxu2 %v495_v0  ;;  %515 = vmatpush.msra.mxu0 %v495_v0  ;;  %v477_v3 = vld [vmem:[%s475_s30 + $0x8] sm:$0xff]  ;;  %v805_v4 = vld [vmem:[#allocation2 + $0x4] ss:$0 sm:$0xff]  ;;  %v806_v5 = vld [vmem:[#allocation2 + $0x5] ss:$0 sm:$0xff] }
 0x1d3   : > { %v476_v6 = vld [vmem:[%s475_s30] sm:$0xff]  ;;  %v482_v8 = vmul.f32 %v805_v4, %v477_v3  ;;  %v543_v16 = vld [vmem:[%s1177_s2 + $0x18] sm:$0xff]  ;;  %v542_v17 = vld [vmem:[%s1177_s2 + $0x10] sm:$0xff] }
 0x1d4   : > { %717 = vmatpush.msra.mxu2 %v494_v1  ;;  %516 = vmatpush.msra.mxu0 %v494_v1  ;;  %v492_v7 = vld [vmem:[%s1176_s1 + $0x40] sm:$0xff]  ;;  %v481_v9 = vmul.f32 %v805_v4, %v476_v6  ;;  %v541_v18 = vld [vmem:[%s1177_s2 + $0x8] sm:$0xff] }
 0x1d5   : > { %v485_v10 = vadd.f32 %v806_v5, %v482_v8  ;;  %720 = vmatpush.msra.mxu3 %v543_v16  ;;  %564 = vmatpush.msra.mxu1 %v543_v16  ;;  %v540_v19 = vld [vmem:[%s1177_s2] sm:$0xff] }
 0x1d6   : > { %718 = vmatpush.msra.mxu2 %v493_v2  ;;  %517 = vmatpush.msra.mxu0 %v493_v2  ;;  %v484_v11 = vadd.f32 %v806_v5, %v481_v9  ;;  %v807_v20 = vld [vmem:[#allocation2 + $0x6] ss:$0 sm:$0xff]  ;;  %v808_v22 = vld [vmem:[#allocation2 + $0x7] ss:$0 sm:$0xff]  ;;  %v809_v32 = vld [vmem:[%s1178_s3 + $0x4] ss:$0 sm:$0xff] }
 0x1d7   : > { %vm487_vm3 = vcmp.ge.f32.partialorder %v485_v10, 0.0  ;;  %v489_v12 = vmul.f32 0.01, %v485_v10  ;;  %721 = vmatpush.msra.mxu3 %v542_v17  ;;  %565 = vmatpush.msra.mxu1 %v542_v17 }
 0x1d8   : > { %719 = vmatpush.msra.mxu2 %v492_v7  ;;  %518 = vmatpush.msra.mxu0 %v492_v7  ;;  %vm486_vm4 = vcmp.ge.f32.partialorder %v484_v11, 0.0  ;;  %v488_v13 = vmul.f32 0.01, %v484_v11 }
 0x1d9   : > { %v491_v14 = vsel %vm487_vm3, %v485_v10, %v489_v12  ;;  %722 = vmatpush.msra.mxu3 %v541_v18  ;;  %566 = vmatpush.msra.mxu1 %v541_v18 }
 0x1da   : > { %v490_v15 = vsel %vm486_vm4, %v484_v11, %v488_v13  ;;  %695 = vmatmul.msk.f32.vlgmr.msra.gmra.mxu2 %vm496_vm2, %v491_v14 }
 0x1db   : > { %694 = vmatmul.msk.f32.vlgmr.msra.gmra.mxu0 %vm496_vm2, %v490_v15  ;;  %723 = vmatpush.msra.mxu3 %v540_v19 }
 0x1dc   : > { %567 = vmatpush.msra.mxu1 %v540_v19 }
 0x258   : > { %v520_v21 = vpop.f32.mrf.mxu0 }
 0x259   : > { %v528_v23 = vmul.f32 %v807_v20, %v520_v21 }
 0x25b   : > { %v532_v24 = vadd.f32 %v808_v22, %v528_v23 }
 0x25d   : > { %vm534_vm5 = vcmp.ge.f32.partialorder %v532_v24, 0.0  ;;  %v536_v25 = vmul.f32 0.01, %v532_v24  ;;  %v523_v26 = vpop.f32.mrf.mxu2 }
 0x25e   : > { %v529_v27 = vmul.f32 %v807_v20, %v523_v26 }
 0x25f   : > { %v538_v28 = vsel %vm534_vm5, %v532_v24, %v536_v25 }
 0x260   : > { %696 = vmatmul.msk.f32.vlgmr.msra.gmra.mxu1 %vm496_vm2, %v538_v28  ;;  %v533_v29 = vadd.f32 %v808_v22, %v529_v27 }
 0x262   : > { %vm535_vm6 = vcmp.ge.f32.partialorder %v533_v29, 0.0  ;;  %v537_v30 = vmul.f32 0.01, %v533_v29 }
 0x264   : > { %v539_v31 = vsel %vm535_vm6, %v533_v29, %v537_v30 }
 0x265   : > { %697 = vmatmul.msk.f32.vlgmr.msra.gmra.mxu3 %vm496_vm2, %v539_v31 }
 0x2dd   : > { %v569_v33 = vpop.f32.mrf.mxu1 }
 0x2de   : > { %v570_v34 = vadd.f32 %v809_v32, %v569_v33 }
 0x2e0   : > { %575 = vst [vmem:[%s1019_s26] sm:$0xff] %v570_v34 }
 0x2e8   : > { %v572_v35 = vpop.f32.mrf.mxu3 }
 0x2e9   : > { %v573_v36 = vadd.f32 %v809_v32, %v572_v35 }
 0x2eb   : > { %576 = vst [vmem:[%s1019_s26 + $0x8] sm:$0xff] %v573_v36 }
 0x2ec PF: > { %s592_s6 = sshll.u32 %s1019_s26, 4  ;;  %s1198_s18 = smov (!%p440_p10, %s888_s18), 0  ;;  %s593_s6 = int_to_ptr.vmem [resolvable:$true] %s592_s6 }
 0x2ed   : > { %s703_s9 = sshll.u32 %s1198_s18, 4  ;;  %s578_s13 = scalar_lea.sflag [#allocation5], %s215_s8 }
 0x2ee   : > { %s591_s12 = scalar_lea.hbm %s1179_s4, %s703_s9  ;;  %s830_s30 = scalar_lea.hbm %s1179_s4, 32 }
 0x2ef   : > { %s594_s23 = sshll.u32 %s591_s12, 4  ;;  %s595_s23 = int_to_ptr.hbm [resolvable:$true] %s594_s23 }
 0x2f0   : > { %s824_s14 = sshra.s32 %s595_s23, 4  ;;  %s825_s14 = int_to_ptr.hbm [resolvable:$true] %s824_s14 }
 0x2f1   : > { %s826_s27 = scalar_lea.hbm %s825_s14, 16  ;;  %p831_p2 = scmp.lt.s32.totalorder %s825_s14, %s1179_s4 }
 0x2f2   : > { %p827_p13 = scmp.ne.s32.totalorder %s825_s14, %s826_s27  ;;  %p832_p3 = scmp.lt.s32.totalorder %s830_s30, %s826_s27 }
 0x2f4   : > { %p828_p0 = pnand %p827_p13, %p990_p7  ;;  %p833_p4 = por %p832_p3, %p831_p2 }
 0x2f6   : > { %p829_p1 = pneg %p828_p0 }
 0x2f8   : > { %p834_p5 = pnand %p833_p4, %p829_p1 }
 0x2fa   : > { %837 = shalt.err (!%p834_p5)
}
 0x2fb   : > { %s908_s8 = smov 128   ;;  %s909_s9 = smov 8  }
 0x2fc   : > { %724 = dma.vmem_to_hbm [thread:$0]  (%p990_p7), %s593_s6, 256, %s595_s23, %s578_s13, %s908_s8, %s908_s8, %s909_s9  }
 0x2fd PF: > { %p730_p6 = scmp.ge.s32.totalorder %s904_s22, 2  ;;  %s609_s10 = sand.u32 1, %s876_s15  }
 0x2fe   : > { %s610_s11 = scalar_lea.sflag [#allocation5], %s609_s10 }
 0x2ff   : > { %p727_p9 = pnand %p730_p6, %p994_p8 }
 0x301   : > { %p728_p10 = pneg %p727_p9 }
 0x303   : > { %871 = dma.done.wait (%p728_p10), %s610_s11, 256  }
 0x304   : > { %873 = vsyncadd (%p728_p10), %s610_s11, 4294967040  ;;  %s17_s22 = sadd.s32 1, %s904_s22   ;;  %s1182_s15 = smov %s880_s16 }
 0x305   : > { %p14_p11 = scmp.ge.s32.totalorder %s17_s22, 8   ;;  %s1183_s16 = smov %s884_s17 }
 0x306   : > { %s1184_s17 = smov %s1004_s7  ;;  %s1185_s18 = smov %s896_s20 }
 0x307   : > { %s1186_s19 = smov %s900_s21  ;;  %s1187_s20 = smov %s1190_s24 }
 0x308   : > { %s1188_s21 = smov %s1194_s25  ;;  %16 = sbr.rel (!%p14_p11) target bundleno = 5 (0x5), region = 98 }
 0x30d   :  { %616 = vsyncpa [#allocation5], 1 }
 0x30e   :  { %618 = vsyncpa [#allocation5 + $0x1], 1 }

</bundles_post_ra>
